<compile_context>
chip_gen: v7x
topology: tpu7x:2x2x1
jax: 0.10.0
libtpu: 0.0.40
codegen_flags: <defaults>
</compile_context>

<pallas_src>
import functools
import math

import jax
import jax.numpy as jnp
from jax.experimental import pallas as pl
from jax.experimental.pallas import tpu as pltpu


# ----------------------------------------------------------------------------
# Fused linear kernel:  y = x @ W + b   (W already transposed, bf16 on the MXU)
# ----------------------------------------------------------------------------
def _linear_kernel(x_ref, w_ref, b_ref, o_ref):
    # x_ref: (TS, D)   w_ref: (D, Dout) bf16   b_ref: (1, Dout) f32
    x = x_ref[...].astype(jnp.bfloat16)
    w = w_ref[...].astype(jnp.bfloat16)
    y = jnp.dot(x, w, preferred_element_type=jnp.float32) + b_ref[...]
    o_ref[...] = y.astype(o_ref.dtype)


def _batched_linear(x, w_t, b, *, out_dtype, seq_tile):
    """x: (P, B, S, D), w_t: (P, D, Dout) (pre-transposed), b: (P, 1, Dout)."""
    P, B, S, D = x.shape
    Dout = w_t.shape[-1]
    assert S % seq_tile == 0
    # TODO(synk): for very large D (>= 2048 f32-equivalent) tile the contraction
    # axis with an accumulator instead of loading the full (D, Dout) weight tile.
    grid = (P, B, S // seq_tile)
    return pl.pallas_call(
        _linear_kernel,
        out_shape=jax.ShapeDtypeStruct((P, B, S, Dout), out_dtype),
        grid=grid,
        in_specs=[
            pl.BlockSpec((None, None, seq_tile, D), lambda p, b_, s: (p, b_, s, 0)),
            pl.BlockSpec((None, D, Dout), lambda p, b_, s: (p, 0, 0)),
            pl.BlockSpec((None, 1, Dout), lambda p, b_, s: (p, 0, 0)),
        ],
        out_specs=pl.BlockSpec(
            (None, None, seq_tile, Dout), lambda p, b_, s: (p, b_, s, 0)
        ),
        compiler_params=pltpu.CompilerParams(
            dimension_semantics=("parallel", "parallel", "parallel")
        ),
    )(x, w_t, b)


# ----------------------------------------------------------------------------
# Flash-attention kernel (online softmax over KV blocks)
# ----------------------------------------------------------------------------
def _flash_attn_kernel(q_ref, k_ref, v_ref, o_ref, m_scr, l_scr, acc_scr, *, scale):
    ki = pl.program_id(3)

    @pl.when(ki == 0)
    def _init():
        m_scr[...] = jnp.full(m_scr.shape, -jnp.inf, dtype=jnp.float32)
        l_scr[...] = jnp.zeros(l_scr.shape, dtype=jnp.float32)
        acc_scr[...] = jnp.zeros(acc_scr.shape, dtype=jnp.float32)

    q = q_ref[...]  # (TQ, Dh) bf16
    k = k_ref[...]  # (TK, Dh) bf16
    v = v_ref[...]  # (TK, Dh) bf16

    # Q @ K^T without materializing a transpose: contract last dim of both.
    s = jax.lax.dot_general(
        q, k, (((1,), (1,)), ((), ())), preferred_element_type=jnp.float32
    ) * scale                                            # (TQ, TK) f32

    # TODO(synk): the optional `mask` argument of the PyTorch forward is not
    # implemented (the default call path uses mask=None).

    m_prev = m_scr[...]
    m_new = jnp.maximum(m_prev, jnp.max(s, axis=-1, keepdims=True))
    alpha = jnp.exp(m_prev - m_new)
    p = jnp.exp(s - m_new)                               # f32 softmax math
    l_scr[...] = alpha * l_scr[...] + jnp.sum(p, axis=-1, keepdims=True)
    acc_scr[...] = alpha * acc_scr[...] + jnp.dot(
        p.astype(v.dtype), v, preferred_element_type=jnp.float32
    )
    m_scr[...] = m_new

    @pl.when(ki == pl.num_programs(3) - 1)
    def _finalize():
        inv_l = pl.reciprocal(l_scr[...], approx=True)   # EUP slot, ~free
        o_ref[...] = (acc_scr[...] * inv_l).astype(o_ref.dtype)


def _flash_attention(q, k, v, *, tq, tk):
    """q, k, v: (B, H, S, Dh) bf16 -> (B, H, S, Dh) bf16."""
    B, H, S, Dh = q.shape
    assert S % tq == 0 and S % tk == 0
    scale = 1.0 / math.sqrt(Dh)
    kernel = functools.partial(_flash_attn_kernel, scale=scale)
    grid = (B, H, S // tq, S // tk)
    return pl.pallas_call(
        kernel,
        out_shape=jax.ShapeDtypeStruct((B, H, S, Dh), q.dtype),
        grid=grid,
        in_specs=[
            pl.BlockSpec((None, None, tq, Dh), lambda b, h, qi, ki: (b, h, qi, 0)),
            pl.BlockSpec((None, None, tk, Dh), lambda b, h, qi, ki: (b, h, ki, 0)),
            pl.BlockSpec((None, None, tk, Dh), lambda b, h, qi, ki: (b, h, ki, 0)),
        ],
        out_specs=pl.BlockSpec(
            (None, None, tq, Dh), lambda b, h, qi, ki: (b, h, qi, 0)
        ),
        scratch_shapes=[
            pltpu.VMEM((tq, 1), jnp.float32),   # running max m
            pltpu.VMEM((tq, 1), jnp.float32),   # running denom l
            pltpu.VMEM((tq, Dh), jnp.float32),  # output accumulator
        ],
        compiler_params=pltpu.CompilerParams(
            dimension_semantics=("parallel", "parallel", "parallel", "arbitrary")
        ),
    )(q, k, v)


# ----------------------------------------------------------------------------
# Full forward pass
# ----------------------------------------------------------------------------
def multi_head_attention(query, key, value, params, num_heads, mask=None,
                         *, seq_tile=128, q_tile=128, k_tile=128):
    if mask is not None:
        # TODO(synk): masked_fill path of the PyTorch module not implemented.
        raise NotImplementedError("mask is not supported")

    B, S, D = query.shape
    H = num_heads
    Dh = D // H
    assert D == H * Dh

    wq, bq, wk, bk, wv, bv, wo, bo = params

    # Pre-transpose the weights once (kernel does x @ W directly) and keep them
    # in bf16 (MXU fast path, half the weight VMEM/HBM footprint).
    w_qkv_t = jnp.stack([wq.T, wk.T, wv.T]).astype(jnp.bfloat16)      # (3, D, D)
    b_qkv = jnp.stack([bq, bk, bv]).reshape(3, 1, D).astype(jnp.float32)
    wo_t = wo.T.astype(jnp.bfloat16)[None]                            # (1, D, D)
    bo_r = bo.reshape(1, 1, D).astype(jnp.float32)

    ts = min(seq_tile, S)
    tq = min(q_tile, S)
    tk = min(k_tile, S)

    # Fused Q/K/V projection: one pallas_call over a stacked leading axis.
    xs = jnp.stack([query, key, value])                               # (3, B, S, D)
    qkv = _batched_linear(xs, w_qkv_t, b_qkv, out_dtype=jnp.bfloat16, seq_tile=ts)

    def split_heads(x):                                               # (B,S,D)->(B,H,S,Dh)
        return x.reshape(B, S, H, Dh).transpose(0, 2, 1, 3)

    qh = split_heads(qkv[0])
    kh = split_heads(qkv[1])
    vh = split_heads(qkv[2])

    attn = _flash_attention(qh, kh, vh, tq=tq, tk=tk)                 # (B,H,S,Dh) bf16
    attn = attn.transpose(0, 2, 1, 3).reshape(B, S, D)                # merge heads

    out = _batched_linear(attn[None], wo_t, bo_r, out_dtype=query.dtype, seq_tile=ts)
    return out[0]


# ----------------------------------------------------------------------------
# Pure-JAX reference mirroring the PyTorch forward exactly (f32)
# ----------------------------------------------------------------------------
def mha_reference(query, key, value, params, num_heads):
    B, S, D = query.shape
    Dh = D // num_heads
    wq, bq, wk, bk, wv, bv, wo, bo = params
    q = query @ wq.T + bq
    k = key @ wk.T + bk
    v = value @ wv.T + bv
    q = q.reshape(B, S, num_heads, Dh).transpose(0, 2, 1, 3)
    k = k.reshape(B, S, num_heads, Dh).transpose(0, 2, 1, 3)
    v = v.reshape(B, S, num_heads, Dh).transpose(0, 2, 1, 3)
    scores = jnp.einsum("bhqd,bhkd->bhqk", q, k) / jnp.sqrt(jnp.float32(Dh))
    attn = jax.nn.softmax(scores, axis=-1)
    out = jnp.einsum("bhqk,bhkd->bhqd", attn, v)
    out = out.transpose(0, 2, 1, 3).reshape(B, S, D)
    return out @ wo.T + bo


if __name__ == "__main__":
    B, S, D, H = 2, 8, 32, 4   # batch, seq, d_model, num_heads

    key0 = jax.random.PRNGKey(0)
    keys = jax.random.split(key0, 12)

    scale = 0.1
    wq = jax.random.normal(keys[0], (D, D), jnp.float32) * scale
    bq = jax.random.normal(keys[1], (D,), jnp.float32) * scale
    wk = jax.random.normal(keys[2], (D, D), jnp.float32) * scale
    bk = jax.random.normal(keys[3], (D,), jnp.float32) * scale
    wv = jax.random.normal(keys[4], (D, D), jnp.float32) * scale
    bv = jax.random.normal(keys[5], (D,), jnp.float32) * scale
    wo = jax.random.normal(keys[6], (D, D), jnp.float32) * scale
    bo = jax.random.normal(keys[7], (D,), jnp.float32) * scale
    params = (wq, bq, wk, bk, wv, bv, wo, bo)

    query = jax.random.normal(keys[8], (B, S, D), jnp.float32)
    key_in = jax.random.normal(keys[9], (B, S, D), jnp.float32)
    value = jax.random.normal(keys[10], (B, S, D), jnp.float32)

    out = multi_head_attention(query, key_in, value, params, num_heads=H)
    out = jax.block_until_ready(out)

    ref = mha_reference(query, key_in, value, params, num_heads=H)
    assert out.shape == (B, S, D)
    # bf16 MXU inputs + approx reciprocal -> compare against the f32 reference
    # with a tolerance appropriate for bf16 numerics.
    assert jnp.allclose(out, ref, atol=5e-2, rtol=5e-2), "mismatch vs reference"

    print("KERNEL_OK")
</pallas_src>

<mosaic_0001>
module attributes {stable_mosaic.version = 11 : i64} {
  func.func @_linear_kernel(%arg0: i32, %arg1: i32, %arg2: i32, %arg3: memref<1x1x8x32xf32, #tpu.memory_space<vmem>>, %arg4: memref<1x32x32xbf16, #tpu.memory_space<vmem>>, %arg5: memref<1x1x32xf32, #tpu.memory_space<vmem>>, %arg6: memref<1x1x8x32xbf16, #tpu.memory_space<vmem>>) attributes {dimension_semantics = [#tpu.dimension_semantics<parallel>, #tpu.dimension_semantics<parallel>, #tpu.dimension_semantics<parallel>], iteration_bounds = array<i64: 3, 2, 1>, scalar_prefetch = 0 : i64, scratch_operands = 0 : i64, tpu.core_type = #tpu.core_type<tc>, window_params = [{transform_indices = @transform_0, window_bounds = array<i64: 1, 1, 8, 32>}, {transform_indices = @transform_1, window_bounds = array<i64: 1, 32, 32>}, {transform_indices = @transform_2, window_bounds = array<i64: 1, 1, 32>}, {transform_indices = @transform_3, window_bounds = array<i64: 1, 1, 8, 32>}]} {
    %c0 = arith.constant 0 : index
    %c0_0 = arith.constant 0 : index
    %c0_1 = arith.constant 0 : index
    %c0_2 = arith.constant 0 : index
    %0 = vector.load %arg3[%c0, %c0_0, %c0_1, %c0_2] : memref<1x1x8x32xf32, #tpu.memory_space<vmem>>, vector<1x1x8x32xf32>
    %1 = vector.shape_cast %0 : vector<1x1x8x32xf32> to vector<8x32xf32>
    %2 = arith.truncf %1 : vector<8x32xf32> to vector<8x32xbf16>
    %c0_3 = arith.constant 0 : index
    %c0_4 = arith.constant 0 : index
    %c0_5 = arith.constant 0 : index
    %3 = vector.load %arg4[%c0_3, %c0_4, %c0_5] : memref<1x32x32xbf16, #tpu.memory_space<vmem>>, vector<1x32x32xbf16>
    %4 = vector.shape_cast %3 : vector<1x32x32xbf16> to vector<32x32xbf16>
    %cst = arith.constant dense<0.000000e+00> : vector<8x32xf32>
    %5 = tpu.matmul %2, %4, %cst {dimension_numbers = #tpu.dot_dimension_numbers<[1], [0], [0], [1], [0, 0, 1, 1], [], []>} : vector<8x32xbf16>, vector<32x32xbf16>, vector<8x32xf32> -> vector<8x32xf32>
    %c0_6 = arith.constant 0 : index
    %c0_7 = arith.constant 0 : index
    %c0_8 = arith.constant 0 : index
    %6 = vector.load %arg5[%c0_6, %c0_7, %c0_8] : memref<1x1x32xf32, #tpu.memory_space<vmem>>, vector<1x1x32xf32>
    %7 = vector.shape_cast %6 : vector<1x1x32xf32> to vector<1x32xf32>
    %8 = vector.broadcast %7 : vector<1x32xf32> to vector<8x32xf32>
    %9 = arith.addf %5, %8 : vector<8x32xf32>
    %10 = arith.truncf %9 : vector<8x32xf32> to vector<8x32xbf16>
    %c0_9 = arith.constant 0 : index
    %c0_10 = arith.constant 0 : index
    %c0_11 = arith.constant 0 : index
    %c0_12 = arith.constant 0 : index
    %11 = vector.load %arg6[%c0_9, %c0_10, %c0_11, %c0_12] : memref<1x1x8x32xbf16, #tpu.memory_space<vmem>>, vector<1x1x8x32xbf16>
    %12 = vector.shape_cast %11 : vector<1x1x8x32xbf16> to vector<8x32xbf16>
    %13 = vector.shape_cast %10 : vector<8x32xbf16> to vector<1x1x8x32xbf16>
    tpu.vector_store %arg6[%c0_9, %c0_10, %c0_11, %c0_12], %13 {strides = array<i32>} : memref<1x1x8x32xbf16, #tpu.memory_space<vmem>>, vector<1x1x8x32xbf16>,
    return
  }
  func.func @transform_0(%arg0: i32, %arg1: i32, %arg2: i32) -> (i32, i32, i32, i32) {
    %c0_i32 = arith.constant 0 : i32
    %c0_i32_0 = arith.constant 0 : i32
    return %arg0, %arg1, %arg2, %c0_i32 : i32, i32, i32, i32
  }
  func.func @transform_1(%arg0: i32, %arg1: i32, %arg2: i32) -> (i32, i32, i32) {
    %c0_i32 = arith.constant 0 : i32
    %c0_i32_0 = arith.constant 0 : i32
    %c0_i32_1 = arith.constant 0 : i32
    return %arg0, %c0_i32, %c0_i32_0 : i32, i32, i32
  }
  func.func @transform_2(%arg0: i32, %arg1: i32, %arg2: i32) -> (i32, i32, i32) {
    %c0_i32 = arith.constant 0 : i32
    %c0_i32_0 = arith.constant 0 : i32
    %c0_i32_1 = arith.constant 0 : i32
    return %arg0, %c0_i32, %c0_i32_0 : i32, i32, i32
  }
  func.func @transform_3(%arg0: i32, %arg1: i32, %arg2: i32) -> (i32, i32, i32, i32) {
    %c0_i32 = arith.constant 0 : i32
    %c0_i32_0 = arith.constant 0 : i32
    return %arg0, %arg1, %arg2, %c0_i32 : i32, i32, i32, i32
  }
}

</mosaic_0001>

<bundles_post_ra>
// kernel: tpu_custom_call.1
= control target key start
LH: loop header
LB: loop body
LE: loop exit
PB: predicated region body
PF: predicated region fallthrough
CT: control target
= control target key end

     0   :  { %s1163_s0 = inlined_call_operand.hbm [shape: f32[3,2,8,32], index: 0, kind: input, shape index: {}]   ;;  %s1164_s1 = inlined_call_operand.hbm [shape: bf16[3,32,32], index: 1, kind: input, shape index: {}]   ;;  %s1165_s2 = inlined_call_operand.vmem [shape: f32[3,1,32], index: 2, kind: input, shape index: {}]   ;;  %s1166_s3 = inlined_call_operand.hbm [shape: bf16[3,2,8,32], index: 3, kind: output, shape index: {}]  }
   0x1   :  { %1173 = sst [smem:[#allocation15_spill]] %s1163_s0 }
   0x2   :  { %8 = vsyncpa [#allocation3], 0 }
   0x3   :  { %10 = vsyncpa [#allocation3 + $0x1], 0 }
   0x4   :  { %11 = vsyncpa [#allocation6], 0 }
   0x5   :  { %13 = vsyncpa [#allocation6 + $0x1], 0 }
   0x6   :  { %14 = vsyncpa [#allocation4], 0 }
   0x7   :  { %16 = vsyncpa [#allocation4 + $0x1], 0  ;;  %s845_s12 = smov 0   ;;  %s847_s13 = smov 0  }
   0x8   :  { %s849_s14 = smov 0   ;;  %s851_s15 = smov 0  }
   0x9   :  { %s853_s16 = smov 0   ;;  %s855_s17 = smov 0  }
   0xa   :  { %s857_s18 = smov 0   ;;  %s859_s19 = smov 0  }
   0xb   :  { %s861_s20 = smov 0   ;;  %s863_s21 = smov 0  }
   0xc   :  { %s865_s22 = smov 0  }
   0xd LB: > { %1174 = sst [smem:[#allocation11_spill]] %s796_s17  ;;  %s482_s23 = sadd.s32 4294967295, %s816_s22   ;;  %s816_s22 = sphi %s865_s22, %s22_s22   ;;  %s812_s21 = sphi %s863_s21, %s1207_s21   ;;  %s808_s20 = sphi %s861_s20, %s1206_s20   ;;  %s804_s19 = sphi %s859_s19, %s1205_s19   ;;  %s800_s18 = sphi %s857_s18, %s1204_s18   ;;  %s796_s17 = sphi %s855_s17, %s1196_s17   ;;  %s792_s16 = sphi %s853_s16, %s1203_s16   ;;  %s788_s15 = sphi %s851_s15, %s1202_s15   ;;  %s784_s14 = sphi %s849_s14, %s1201_s14   ;;  %s780_s13 = sphi %s847_s13, %s1200_s13   ;;  %s776_s12 = sphi %s845_s12, %s1199_s12  }
   0xe   : > { %s483_s24 = sadd.s32 4294967294, %s816_s22   ;;  %s37_s25 = sadd.s32 1, %s808_s20 }
   0xf   : > { %s41_s26 = sadd.s32 1, %s812_s21  ;;  %p39_p0 = scmp.ge.s32.totalorder %s37_s25, 2 }
  0x10   : > { %s52_s27 = sadd.s32 1, %s796_s17  ;;  %p59_p1 = scmp.ne.s32.totalorder %s796_s17, %s792_s16 }
  0x11   : > { %p60_p2 = scmp.eq.s32.totalorder %s816_s22, 0  ;;  %s1209_s25 = smov (%p39_p0, %s37_s25), 0 }
  0x12   : > { %1175 = sst [smem:[#allocation12_spill]] %s1209_s25  ;;  %s1211_s26 = smov (!%p39_p0, %s41_s26), %s812_s21 }
  0x13   : > { %s46_s28 = ssub.s32 %s808_s20, %s1209_s25  ;;  %p918_p3 = por %p60_p2, %p59_p1 }
  0x14   : > { %p43_p4 = scmp.ge.s32.totalorder %s1211_s26, 3  ;;  %p65_p5 = scmp.ne.s32.totalorder %s792_s16, %s788_s15 }
  0x15   : > { %p924_p6 = scmp.eq.s32.totalorder %s482_s23, 0  ;;  %s78_s4 = sadd.s32 1, %s784_s14 }
  0x16   : > { %s1213_s26 = smov (%p43_p4, %s1211_s26), 0  ;;  %p85_p8 = scmp.ne.s32.totalorder %s784_s14, %s780_s13 }
  0x17   : > { %1178 = sst [smem:[#allocation13_spill]] %s1213_s26  ;;  %p936_p7 = por %p924_p6, %p65_p5 }
  0x18   : > { %s45_s6 = ssub.s32 %s812_s21, %s1213_s26  ;;  %p91_p9 = scmp.ne.s32.totalorder %s780_s13, %s776_s12 }
  0x19   : > { %s1179_s5 = scalar_select %p936_p7, 1, 0 }
  0x1a   : > { %s47_s7 = sor.u32 %s46_s28, %s45_s6  ;;  %p76_p10 = scmp.eq.s32.totalorder %s45_s6, 0 }
  0x1b   : > { %p50_p11 = scmp.eq.s32.totalorder %s47_s7, 0  ;;  %p948_p12 = por %p85_p8, %p60_p2 }
  0x1c   : > { %s953_s9 = scalar_select %p76_p10, %s784_s14, %s78_s4  }
  0x1d   : > { %s956_s10 = scalar_select %p50_p11, %s796_s17, %s52_s27  }
  0x1e   : > { %p960_p13 = por %p91_p9, %p924_p6  ;;  %p145_p0 = scmp.eq.s32.totalorder %s482_s23, 5 }
  0x1f   : > { %1181 = sst [smem:[#allocation14_spill]] %s956_s10  ;;  %p151_p4 = scmp.eq.s32.totalorder %s483_s24, 5 }
  0x20   : > { %s1182_s11 = scalar_select %p960_p13, 1, 0 }
  0x21   : > { %p967_p2 = por %p145_p0, %p59_p1  ;;  %p534_p8 = scmp.lt.s32.totalorder %s816_s22, 6 }
  0x22   : > { %p975_p10 = por %p151_p4, %p65_p5  ;;  %s171_s28 = sand.u32 1, %s796_s17  }
  0x23   : > { %s1183_s12 = scalar_select %p967_p2, 1, 0 }
  0x24   : > { %s1184_s27 = scalar_select %p975_p10, 1, 0 }
  0x25   : > { %s486_s30 = sshll.u32 %s171_s28, 3  ;;  %s487_s4 = sshll.u32 %s812_s21, 1 }
  0x26   : > { %s181_s6 = sadd.s32 %s808_s20, %s487_s4  ;;  %s175_s7 = scalar_lea.vmem [#allocation2], %s486_s30 }
  0x27   : > { %s185_s23 = sshll.u32 %s175_s7, 4  ;;  %s488_s26 = sshll.u32 %s181_s6, 7  ;;  %s982_s23 = int_to_ptr.vmem [resolvable:$true] %s185_s23 }
  0x28   : > { %s1185_s0 = sld [smem:[#allocation15_spill]]  ;;  %p991_p1 = pnand %p534_p8, %p918_p3 }
  0x29   : > { %p997_p5 = pnand %p534_p8, %p948_p12  ;;  %s172_s25 = scalar_lea.sflag [#allocation3], %s171_s28 }
  0x2a   : > { %p632_p0 = pneg %p991_p1 }
  0x2e   : > { %s987_s10 = scalar_lea.hbm %s1185_s0, %s488_s26  ;;  %s635_s8 = scalar_lea.hbm %s1185_s0, 768 }
  0x2f   : > { %s630_s26 = scalar_lea.hbm %s987_s10, 128  ;;  %p636_p12 = scmp.lt.u32.totalorder %s987_s10, %s1185_s0 }
  0x30   : > { %p631_p11 = scmp.ne.s32.totalorder %s987_s10, %s630_s26  ;;  %p637_p8 = scmp.lt.u32.totalorder %s635_s8, %s630_s26 }
  0x31   : > { %p639_p9 = scmp.lt.u32.totalorder %s630_s26, %s987_s10 }
  0x32   : > { %p633_p3 = pnand %p632_p0, %p631_p11  ;;  %p638_p6 = por %p637_p8, %p636_p12 }
  0x34   : > { %p634_p4 = pneg %p633_p3  ;;  %p640_p10 = por %p639_p9, %p638_p6 }
  0x36   : > { %p641_p2 = pnand %p640_p10, %p634_p4 }
  0x38   : > { %644 = shalt.err (!%p641_p2)
}
  0x39   : > { %s645_s28 = scalar_lea.vmem %s982_s23, 128  ;;  %s818_s24 = smov [#allocation2]  }
  0x3a   : > { %p646_p11 = scmp.ne.s32.totalorder %s982_s23, %s645_s28  ;;  %s650_s29 = sshll.u32 %s818_s24, 4  ;;  %s651_s29 = int_to_ptr.vmem [resolvable:$false] %s650_s29 }
  0x3b   : > { %s652_s4 = scalar_lea.vmem %s651_s29, 256  ;;  %p653_p7 = scmp.lt.s32.totalorder %s982_s23, %s651_s29 }
  0x3c   : > { %p648_p3 = pnand %p646_p11, %p632_p0  ;;  %p654_p12 = scmp.lt.s32.totalorder %s652_s4, %s645_s28 }
  0x3e   : > { %p649_p13 = pneg %p648_p3  ;;  %p655_p8 = por %p654_p12, %p653_p7 }
  0x40   : > { %p656_p6 = pnand %p655_p8, %p649_p13 }
  0x42   : > { %659 = shalt.err (!%p656_p6)
}
  0x43   : > { %526 = dma.hbm_to_vmem [thread:$0]  (!%p991_p1), %s987_s10, 128, %s982_s23, %s172_s25  }
  0x44   : > { %p1188_p2 = scmp.lt.s32.totalorder %s816_s22, 7  ;;  %p1189_p10 = scmp.ge.s32.totalorder %s816_s22, 1 }
  0x45   : > { %s192_s8 = sand.u32 1, %s784_s14   ;;  %s505_s6 = sshll.u32 %s812_s21, 8 }
  0x46   : > { %p1032_p9 = pnand %p1189_p10, %p1188_p2  ;;  %s489_s7 = sshll.u32 %s192_s8, 4 }
  0x47   : > { %s1041_s24 = scalar_lea.hbm %s1164_s1, %s505_s6  ;;  %s196_s29 = scalar_lea.vmem [#allocation5], %s489_s7 }
  0x48   : > { %s203_s10 = sshll.u32 %s196_s29, 4  ;;  %s1045_s23 = scalar_lea.sflag [#allocation6], %s192_s8  ;;  %s1043_s10 = int_to_ptr.vmem [resolvable:$true] %s203_s10 }
  0x49   : > { %s660_s25 = scalar_lea.hbm %s1041_s24, 256  ;;  %p662_p13 = pneg %p997_p5 }
  0x4a   : > { %p661_p7 = scmp.ne.s32.totalorder %s1041_s24, %s660_s25  ;;  %s665_s28 = scalar_lea.hbm %s1164_s1, 768 }
  0x4b   : > { %p666_p4 = scmp.lt.u32.totalorder %s1041_s24, %s1164_s1  ;;  %p667_p11 = scmp.lt.u32.totalorder %s665_s28, %s660_s25 }
  0x4c   : > { %p663_p1 = pnand %p662_p13, %p661_p7  ;;  %p669_p12 = scmp.lt.u32.totalorder %s660_s25, %s1041_s24 }
  0x4d   : > { %p668_p3 = por %p667_p11, %p666_p4 }
  0x4e   : > { %p664_p0 = pneg %p663_p1 }
  0x4f   : > { %p670_p8 = por %p669_p12, %p668_p3 }
  0x51   : > { %p671_p6 = pnand %p670_p8, %p664_p0 }
  0x53   : > { %674 = shalt.err (!%p671_p6)
}
  0x54   : > { %s675_s8 = scalar_lea.vmem %s1043_s10, 256  ;;  %s819_s7 = smov [#allocation5]  }
  0x55   : > { %p676_p2 = scmp.ne.s32.totalorder %s1043_s10, %s675_s8  ;;  %s680_s29 = sshll.u32 %s819_s7, 4  ;;  %s681_s29 = int_to_ptr.vmem [resolvable:$false] %s680_s29 }
  0x56   : > { %s682_s0 = scalar_lea.vmem %s681_s29, 512  ;;  %p683_p1 = scmp.lt.s32.totalorder %s1043_s10, %s681_s29 }
  0x57   : > { %p678_p10 = pnand %p676_p2, %p662_p13  ;;  %p684_p4 = scmp.lt.s32.totalorder %s682_s0, %s675_s8 }
  0x59   : > { %p679_p7 = pneg %p678_p10  ;;  %p685_p11 = por %p684_p4, %p683_p1 }
  0x5b   : > { %p686_p3 = pnand %p685_p11, %p679_p7 }
  0x5d   : > { %689 = shalt.err (!%p686_p3)
}
  0x5e   : > { %s820_s25 = smov 64   ;;  %s821_s4 = smov 4  }
  0x5f   : > { %529 = dma.hbm_to_vmem [thread:$0]  (!%p997_p5), %s1041_s24, 256, %s1043_s10, %s1045_s23, %s820_s25, %s820_s25, %s821_s4  }
  0x60   : > { %221 = sbr.rel (%p1032_p9) target bundleno = 347 (0x15b), region = 32  ;;  %s1076_s6 = sand.u32 (!%p1032_p9), 1, %s792_s16  }
  0x61   : > { %s493_s28 = sshll.u32 (!%p1032_p9), %s1076_s6, 3  ;;  %s224_s17 = scalar_lea.sflag (!%p1032_p9), [#allocation3], %s1076_s6 }
  0x62   : > { %s227_s8 = scalar_lea.vmem (!%p1032_p9), [#allocation2], %s493_s28  ;;  %p1191_p13 = scmp.ne.s32.totalorder (!%p1032_p9), %s1179_s5, 0 }
  0x67   : > { %763 = dma.done.wait (%p1191_p13), %s224_s17, 128  }
  0x68   : > { %765 = vsyncadd (%p1191_p13), %s224_s17, 4294967168  ;;  %s232_s30 = sand.u32 1, %s780_s13   ;;  %p1192_p5 = scmp.ne.s32.totalorder %s1182_s11, 0 }
  0x69   : > { %s494_s24 = sshll.u32 %s232_s30, 4  ;;  %s233_s26 = scalar_lea.sflag [#allocation6], %s232_s30 }
  0x6a   : > { %s236_s10 = scalar_lea.vmem [#allocation5], %s494_s24 }
  0x6b   : > { %767 = dma.done.wait (%p1192_p5), %s233_s26, 256  }
  0x6c   : > { %769 = vsyncadd (%p1192_p5), %s233_s26, 4294967040  ;;  %v822_v0 = vmov 0.0   ;;  %vm823_vm0 = vmmov 0   ;;  %v628_v1 = vld [vmem:[%s236_s10] sm:$0xff]   ;;  %v629_v2 = vld [vmem:[%s236_s10 + $0x8] sm:$0xff]   ;;  %vm296_vm1 = vcmask 261120  }
  0x6d   : > { %509 = vmatprep.subr.bf16.mxu0 %v822_v0  ;;  %513 = vmatprep.mubr.msk.bf16.mxu0 %vm823_vm0, %v822_v0  ;;  %v271_v3 = vld [vmem:[%s227_s8] sm:$0xff]  ;;  %p267_p9 = scmp.lt.s32.totalorder %s804_s19, 2  ;;  %s495_s11 = sshll.u32 %s1076_s6, 2  ;;  %vm341_vm2 = vcmask 257024  }
  0x6e   : > { %510 = vmatpush3.bf16.msra.mxu0 %v628_v1  ;;  %v272_v4 = vpack.c.bf16 %v271_v3, %v271_v3  ;;  %s501_s23 = sshll.u32 %s804_s19, 1  ;;  %s266_s28 = scalar_lea.vmem [#allocation7], %s495_s11 }
  0x6f   : > { %511 = vmatprep.subr.bf16.mxu0 %v822_v0  ;;  %s268_s5 = scalar_select %p267_p9, %s804_s19, 2 }
  0x70   : > { %s356_s25 = sadd.s32 %s800_s18, %s501_s23  ;;  %s360_s17 = sshll.u32 %s266_s28, 4  ;;  %s1102_s17 = int_to_ptr.vmem [resolvable:$true] %s360_s17 }
  0x71   : > { %s269_s0 = scalar_lea.vmem %s1165_s2, %s268_s5  ;;  %s502_s4 = sshll.u32 %s356_s25, 6 }
  0x72   : > { %512 = vmatpush3.bf16.msra.mxu0 %v629_v2  ;;  %v496_v5 = vld [vmem:[%s269_s0] ss:$0 sm:$0xff]  ;;  %s1100_s30 = scalar_lea.hbm %s1166_s3, %s502_s4  ;;  %s344_s18 = scalar_lea.sflag [#allocation4], %s1076_s6 }
  0x73   : > { %s690_s24 = scalar_lea.vmem %s1102_s17, 64  ;;  %p1193_p12 = scmp.ne.s32.totalorder %s1183_s12, 0 }
  0x74   : > { %p691_p0 = scmp.ne.s32.totalorder %s1102_s17, %s690_s24  ;;  %s824_s26 = smov [#allocation7]  }
  0x75   : > { %514 = vmatmul.mubr.msk.bf16.vlgmr.msra.gmra.mrb[0].mxu0 %vm296_vm1, %v272_v4  ;;  %s694_s10 = sshll.u32 %s824_s26, 4  ;;  %s695_s10 = int_to_ptr.vmem [resolvable:$false] %s694_s10 }
  0x76   : > { %p692_p8 = pnand %p691_p0, %p1193_p12  ;;  %s696_s5 = scalar_lea.vmem %s695_s10, 128 }
  0x77   : > { %p697_p2 = scmp.lt.s32.totalorder %s1102_s17, %s695_s10  ;;  %p698_p10 = scmp.lt.s32.totalorder %s696_s5, %s690_s24 }
  0x78   : > { %p693_p6 = pneg %p692_p8 }
  0x79   : > { %p699_p7 = por %p698_p10, %p697_p2 }
  0x7b   : > { %p700_p1 = pnand %p699_p7, %p693_p6 }
 0x148   : > { %v334_v6 = vpop.f32.mrb[0].mxu0 }
 0x149   : > { %v335_v7 = vadd.f32 %v496_v5, %v334_v6  ;;  %v515_v8 = vpop.f32.mrb[1].mxu0 }
 0x14a   : > { %v337_v9 = vpop.f32.mrb[2].mxu0 }
 0x14b   : > { %v340_v10 = vpack.c.bf16 %v335_v7, %v335_v7  ;;  %v516_v11 = vpop.f32.mrb[3].mxu0 }
 0x14d   : > { %342 = vst.msk [vmem:[%s266_s28] sm:$0xf] %vm341_vm2, %v340_v10 }
 0x14e   : > { %703 = shalt.err (!%p700_p1)
}
 0x14f   : > { %s704_s6 = scalar_lea.hbm %s1100_s30, 64  ;;  %s708_s7 = scalar_lea.hbm %s1166_s3, 384 }
 0x150   : > { %p705_p4 = scmp.ne.s32.totalorder %s1100_s30, %s704_s6  ;;  %p709_p13 = scmp.lt.u32.totalorder %s1100_s30, %s1166_s3 }
 0x151   : > { %p710_p5 = scmp.lt.u32.totalorder %s708_s7, %s704_s6  ;;  %p712_p0 = scmp.lt.u32.totalorder %s704_s6, %s1100_s30 }
 0x152   : > { %p706_p11 = pnand %p705_p4, %p1193_p12 }
 0x153   : > { %p711_p9 = por %p710_p5, %p709_p13 }
 0x154   : > { %p707_p3 = pneg %p706_p11 }
 0x155   : > { %p713_p8 = por %p712_p0, %p711_p9 }
 0x157   : > { %p714_p6 = pnand %p713_p8, %p707_p3 }
 0x159   : > { %717 = shalt.err (!%p714_p6)
}
 0x15a   : > { %521 = dma.vmem_to_hbm [thread:$0]  (%p1193_p12), %s1102_s17, 64, %s1100_s30, %s344_s18  }
 0x15b PF: > { %p535_p2 = scmp.ge.s32.totalorder %s816_s22, 2  ;;  %s372_s25 = sand.u32 1, %s788_s15  }
 0x15c   : > { %p1194_p10 = scmp.ne.s32.totalorder %s1184_s27, 0  ;;  %s373_s4 = scalar_lea.sflag [#allocation4], %s372_s25 }
 0x15e   : > { %p531_p7 = pnand %p535_p2, %p1194_p10 }
 0x160   : > { %771 = dma.done.wait (!%p531_p7), %s373_s4, 64  }
 0x161   : > { %773 = vsyncadd (!%p531_p7), %s373_s4, 4294967232  ;;  %s22_s22 = sadd.s32 1, %s816_s22   ;;  %s1195_s28 = sld [smem:[#allocation11_spill]] }
 0x162   : > { %p19_p1 = scmp.ge.s32.totalorder %s22_s22, 8   ;;  %s1196_s17 = sld [smem:[#allocation14_spill]] }
 0x163   : > { %s1197_s8 = sld [smem:[#allocation12_spill]]  ;;  %s1198_s30 = sld [smem:[#allocation13_spill]] }
 0x164   : > { %s1199_s12 = smov %s780_s13  ;;  %s1200_s13 = smov %s784_s14 }
 0x165   : > { %s1201_s14 = smov %s953_s9  ;;  %s1202_s15 = smov %s792_s16 }
 0x166   : > { %s1204_s18 = smov %s808_s20  ;;  %s1205_s19 = smov %s812_s21 }
 0x167   : > { %s1203_s16 = smov %s1195_s28  ;;  %21 = sbr.rel (!%p19_p1) target bundleno = 13 (0xd), region = 93 }
 0x169   : > { %s1206_s20 = smov %s1197_s8  ;;  %s1207_s21 = smov %s1198_s30 }
 0x16e   :  { %378 = vsyncpa [#allocation3], 1 }
 0x16f   :  { %380 = vsyncpa [#allocation3 + $0x1], 1 }
 0x170   :  { %381 = vsyncpa [#allocation6], 1 }
 0x171   :  { %383 = vsyncpa [#allocation6 + $0x1], 1 }
 0x172   :  { %384 = vsyncpa [#allocation4], 1 }
 0x173   :  { %386 = vsyncpa [#allocation4 + $0x1], 1 }

</bundles_post_ra>
